<compile_context>
chip_gen: v7x
topology: tpu7x:2x2x1
jax: 0.10.0
libtpu: 0.0.40
codegen_flags: <defaults>
</compile_context>

<pallas_src>
import jax
import jax.numpy as jnp
import numpy as np
from jax.experimental import pallas as pl
from jax.experimental.pallas import tpu as pltpu


# Keep at least this many grid programs when possible: 2 TensorCores (v7x)
# x >=2 blocks each, plus enough steps for the software pipeline to fill.
_MIN_GRID_PROGRAMS = 8


def _vmem_capacity_bytes():
    """Physical VMEM per TensorCore, with a conservative fallback."""
    try:
        info = pltpu.get_tpu_info()
    except Exception:
        return 64 * 1024 * 1024          # v7x-safe fallback
    for attr in ("vmem_capacity_bytes", "vmem_size_bytes", "vmem_bytes"):
        v = getattr(info, attr, None)
        if isinstance(v, int) and v > 0:
            return v
    return 64 * 1024 * 1024


def _vmem_budget():
    """(per-block byte budget, vmem_limit_bytes) derived from the chip.

    v7x (64 MiB VMEM): limit ~48 MiB, blocks ~8 MiB.
    v5e/v6e (128 MiB): limit ~96 MiB, blocks ~16 MiB.
    The /6 leaves room for double-buffered in+out blocks (~4x the budget in
    flight) plus resident weight/bias and compiler scratch.
    """
    cap = _vmem_capacity_bytes()
    limit = min((cap * 3) // 4, 96 * 1024 * 1024)
    return limit // 6, limit


def _pick_tile(total, rows_per_unit, unit_bytes, budget_bytes, override=None):
    """Pick the number of rows per block along the flattened grid axis.

    Legal tiles `d` divide `total` and give an output-block sublane extent
    (d * rows_per_unit) that is a multiple of 8 (or the block spans the whole
    axis).  Preference order:
      1) largest legal d that fits `budget_bytes` AND leaves >= _MIN_GRID_PROGRAMS
         programs (keeps both v7x TensorCores fed),
      2) largest legal d that fits the budget,
      3) smallest legal d.
    """
    def legal(d):
        return total % d == 0 and (d == total or (d * rows_per_unit) % 8 == 0)

    if override is not None:
        if not legal(override):
            raise ValueError(f"invalid tile override {override} for extent {total}")
        return override

    divisors = [d for d in range(1, total + 1) if legal(d)]
    cands = [d for d in divisors
             if d * unit_bytes <= budget_bytes and total // d >= _MIN_GRID_PROGRAMS]
    if cands:
        return max(cands)
    cands = [d for d in divisors if d * unit_bytes <= budget_bytes]
    if cands:
        return max(cands)
    return min(divisors)


# ---------------------------------------------------------------------------
# Kernels
# ---------------------------------------------------------------------------
def _pool_matmul_kernel(x_ref, w2_ref, b_ref, o_ref):
    # x_ref : (tile, 2, Wo, 2*C_in)  dim 1 = even/odd window row,
    #                                lane halves of dim 3 = even/odd window col.
    # w2_ref: (2*C_in, C_out) = concat([W, W], 0) * 0.25  (column-pair reduction
    #         and pool scale folded into the matmul K dimension).
    # b_ref : (1, C_out) f32.        o_ref: (tile*Wo, C_out).
    x = x_ref[...]
    t, _, wo, k = x.shape
    w2 = w2_ref[...]
    # Leading-dim index + leading-dim merge (relayout only if Wo % 8 != 0).
    r0 = x[:, 0].reshape(t * wo, k)
    r1 = x[:, 1].reshape(t * wo, k)
    # Two MXU matmuls, f32 accumulation; row-pair sum happens in f32.
    acc = jnp.dot(r0, w2, preferred_element_type=jnp.float32)
    acc = acc + jnp.dot(r1, w2, preferred_element_type=jnp.float32)
    o_ref[...] = (acc + b_ref[...]).astype(o_ref.dtype)


def _conv_only_kernel(x_ref, w_ref, b_ref, o_ref):
    # x_ref: (tile, C_in), w_ref: (C_in, C_out), b_ref: (1, C_out) f32.
    y = jnp.dot(x_ref[...], w_ref[...], preferred_element_type=jnp.float32) + b_ref[...]
    o_ref[...] = y.astype(o_ref.dtype)


# ---------------------------------------------------------------------------
# Wrapper (mirrors Downsample.forward)
# ---------------------------------------------------------------------------
def downsample(x_nchw, weight=None, bias=None, *, stride=1, dilation=1,
               tile_rows=None):
    """Pallas version of Downsample.forward.

    x_nchw : (N, C_in, H, W)   PyTorch NCHW input.
    weight : (C_out, C_in) 1x1-conv weight (== torch conv.weight[:, :, 0, 0]),
             or None when in_chs == out_chs (conv = Identity).
    bias   : (C_out,) conv bias or None.
    tile_rows : optional tile override (pooled rows per block on the pool path,
             flattened spatial positions per block on the conv-only path).
    """
    if dilation != 1:
        # TODO(synk): AvgPool2dSame path (dilation > 1) not implemented.
        raise NotImplementedError("dilation > 1 path not implemented")

    N, C_in, H, W = x_nchw.shape
    do_pool = stride > 1
    do_conv = weight is not None
    if not do_pool and not do_conv:
        return x_nchw                                   # both submodules Identity

    # NCHW -> NHWC boundary glue (one XLA transpose).  Goes away if the model
    # keeps activations NHWC; the kernel never relayouts in HBM.
    x = jnp.transpose(x_nchw, (0, 2, 3, 1))
    dtype = x.dtype
    isz = dtype.itemsize
    budget, vmem_limit = _vmem_budget()

    C_out = weight.shape[0] if do_conv else C_in
    b = (jnp.zeros((C_out,), jnp.float32) if bias is None
         else jnp.asarray(bias, jnp.float32)).reshape(1, C_out)

    if do_pool:
        assert stride == 2, "Downsample uses AvgPool2d(kernel=2, stride=2)"
        # TODO(synk): ceil_mode partial edge windows for odd H/W not handled.
        assert H % 2 == 0 and W % 2 == 0
        Ho, Wo = H // 2, W // 2

        # Metadata-only reshape exposing the 2x2 taps (no HBM data movement):
        #   dim 1 (size 2)        -> even/odd input row of the window
        #   lane halves of 2*C_in -> even/odd input column of the window
        # Batch is folded into the row axis so one grid axis covers everything.
        xv = x.reshape(N * Ho, 2, Wo, 2 * C_in)

        # Stacked weight: column-pair reduction + 0.25 pool scale folded in.
        wt = jnp.asarray(weight, dtype).T if do_conv else jnp.eye(C_in, dtype=dtype)
        w2 = jnp.concatenate([wt, wt], axis=0) * jnp.asarray(0.25, dtype)

        rows = N * Ho
        unit = 2 * W * C_in * isz + Wo * C_out * isz    # in+out bytes per pooled row
        tile = _pick_tile(rows, Wo, unit, budget, tile_rows)
        grid = (rows // tile,)

        out_flat = pl.pallas_call(
            _pool_matmul_kernel,
            out_shape=jax.ShapeDtypeStruct((N * Ho * Wo, C_out), dtype),
            grid=grid,
            in_specs=[
                pl.BlockSpec((tile, 2, Wo, 2 * C_in), lambda i: (i, 0, 0, 0)),
                pl.BlockSpec((2 * C_in, C_out), lambda i: (0, 0)),
                pl.BlockSpec((1, C_out), lambda i: (0, 0)),
            ],
            out_specs=pl.BlockSpec((tile * Wo, C_out), lambda i: (i, 0)),
            compiler_params=pltpu.CompilerParams(
                dimension_semantics=("parallel",),
                vmem_limit_bytes=vmem_limit),
        )(xv, w2, b)
        out_nhwc = out_flat.reshape(N, Ho, Wo, C_out)   # metadata-only reshape
    else:
        # conv-only: 1x1 conv over NHWC == (N*H*W, C_in) x (C_in, C_out) matmul;
        # batch folded into the flattened spatial axis.
        M = N * H * W
        xv = x.reshape(M, C_in)                         # metadata-only reshape
        wt = jnp.asarray(weight, dtype).T
        unit = (C_in + C_out) * isz
        tile = _pick_tile(M, 1, unit, budget, tile_rows)
        grid = (M // tile,)

        out_flat = pl.pallas_call(
            _conv_only_kernel,
            out_shape=jax.ShapeDtypeStruct((M, C_out), dtype),
            grid=grid,
            in_specs=[
                pl.BlockSpec((tile, C_in), lambda i: (i, 0)),
                pl.BlockSpec((C_in, C_out), lambda i: (0, 0)),
                pl.BlockSpec((1, C_out), lambda i: (0, 0)),
            ],
            out_specs=pl.BlockSpec((tile, C_out), lambda i: (i, 0)),
            compiler_params=pltpu.CompilerParams(
                dimension_semantics=("parallel",),
                vmem_limit_bytes=vmem_limit),
        )(xv, wt, b)
        out_nhwc = out_flat.reshape(N, H, W, C_out)     # metadata-only reshape

    return jnp.transpose(out_nhwc, (0, 3, 1, 2))        # NHWC -> NCHW glue


# ---------------------------------------------------------------------------
# Demo / correctness check
# ---------------------------------------------------------------------------
if __name__ == "__main__":
    N, C_in, C_out, H, W = 2, 4, 8, 16, 16

    key = jax.random.PRNGKey(0)
    k_x, k_w, k_b = jax.random.split(key, 3)
    x = jax.random.normal(k_x, (N, C_in, H, W), jnp.float32)
    weight = jax.random.normal(k_w, (C_out, C_in), jnp.float32) * 0.1   # 1x1 conv
    bias = jax.random.normal(k_b, (C_out,), jnp.float32) * 0.1

    # --- stride-2 pool + 1x1 conv (in_chs != out_chs) ------------------------
    out = jax.block_until_ready(downsample(x, weight, bias, stride=2))
    pooled_ref = x.reshape(N, C_in, H // 2, 2, W // 2, 2).mean(axis=(3, 5))
    ref = jnp.einsum("nchw,oc->nohw", pooled_ref, weight) + bias[None, :, None, None]
    assert out.shape == ref.shape and out.dtype == ref.dtype
    np.testing.assert_allclose(np.asarray(out), np.asarray(ref), rtol=1e-5, atol=1e-5)

    # Same op with an explicit row tile (exercises the flattened (N*Ho) grid).
    out_t = jax.block_until_ready(downsample(x, weight, bias, stride=2, tile_rows=2))
    np.testing.assert_allclose(np.asarray(out_t), np.asarray(ref), rtol=1e-5, atol=1e-5)

    # --- stride-2 pool only (in_chs == out_chs -> conv is Identity) ----------
    out_p = jax.block_until_ready(downsample(x, None, None, stride=2, tile_rows=4))
    np.testing.assert_allclose(np.asarray(out_p), np.asarray(pooled_ref),
                               rtol=1e-5, atol=1e-5)

    # --- 1x1 conv only (stride 1, in_chs != out_chs -> pool is Identity) -----
    out_c = jax.block_until_ready(downsample(x, weight, bias, stride=1, tile_rows=64))
    ref_c = jnp.einsum("nchw,oc->nohw", x, weight) + bias[None, :, None, None]
    np.testing.assert_allclose(np.asarray(out_c), np.asarray(ref_c),
                               rtol=1e-5, atol=1e-5)

    print("KERNEL_OK")
</pallas_src>

<mosaic_0001>
module attributes {stable_mosaic.version = 11 : i64} {
  func.func @_pool_matmul_kernel(%arg0: i32, %arg1: memref<2x2x8x8xf32, #tpu.memory_space<vmem>>, %arg2: memref<8x8xf32, #tpu.memory_space<vmem>>, %arg3: memref<1x8xf32, #tpu.memory_space<vmem>>, %arg4: memref<16x8xf32, #tpu.memory_space<vmem>>) attributes {dimension_semantics = [#tpu.dimension_semantics<parallel>], iteration_bounds = array<i64: 8>, scalar_prefetch = 0 : i64, scratch_operands = 0 : i64, tpu.core_type = #tpu.core_type<tc>, window_params = [{transform_indices = @transform_0, window_bounds = array<i64: 2, 2, 8, 8>}, {pipeline_mode = #tpu.pipeline_mode<synchronous>, transform_indices = @transform_1, window_bounds = array<i64: 8, 8>}, {pipeline_mode = #tpu.pipeline_mode<synchronous>, transform_indices = @transform_2, window_bounds = array<i64: 1, 8>}, {transform_indices = @transform_3, window_bounds = array<i64: 16, 8>}]} {
    %c0 = arith.constant 0 : index
    %c0_0 = arith.constant 0 : index
    %c0_1 = arith.constant 0 : index
    %c0_2 = arith.constant 0 : index
    %0 = vector.load %arg1[%c0, %c0_0, %c0_1, %c0_2] : memref<2x2x8x8xf32, #tpu.memory_space<vmem>>, vector<2x2x8x8xf32>
    %c0_3 = arith.constant 0 : index
    %c0_4 = arith.constant 0 : index
    %1 = vector.load %arg2[%c0_3, %c0_4] : memref<8x8xf32, #tpu.memory_space<vmem>>, vector<8x8xf32>
    %2 = vector.extract_strided_slice %0 {offsets = [0, 0, 0, 0], sizes = [2, 1, 8, 8], strides = [1, 1, 1, 1]} : vector<2x2x8x8xf32> to vector<2x1x8x8xf32>
    %3 = vector.shape_cast %2 : vector<2x1x8x8xf32> to vector<2x8x8xf32>
    %4 = vector.shape_cast %3 : vector<2x8x8xf32> to vector<16x8xf32>
    %5 = vector.extract_strided_slice %0 {offsets = [0, 1, 0, 0], sizes = [2, 1, 8, 8], strides = [1, 1, 1, 1]} : vector<2x2x8x8xf32> to vector<2x1x8x8xf32>
    %6 = vector.shape_cast %5 : vector<2x1x8x8xf32> to vector<2x8x8xf32>
    %7 = vector.shape_cast %6 : vector<2x8x8xf32> to vector<16x8xf32>
    %cst = arith.constant dense<0.000000e+00> : vector<16x8xf32>
    %8 = tpu.matmul %4, %1, %cst {dimension_numbers = #tpu.dot_dimension_numbers<[1], [0], [0], [1], [0, 0, 1, 1], [], []>} : vector<16x8xf32>, vector<8x8xf32>, vector<16x8xf32> -> vector<16x8xf32>
    %cst_5 = arith.constant dense<0.000000e+00> : vector<16x8xf32>
    %9 = tpu.matmul %7, %1, %cst_5 {dimension_numbers = #tpu.dot_dimension_numbers<[1], [0], [0], [1], [0, 0, 1, 1], [], []>} : vector<16x8xf32>, vector<8x8xf32>, vector<16x8xf32> -> vector<16x8xf32>
    %10 = arith.addf %8, %9 : vector<16x8xf32>
    %c0_6 = arith.constant 0 : index
    %c0_7 = arith.constant 0 : index
    %11 = vector.load %arg3[%c0_6, %c0_7] : memref<1x8xf32, #tpu.memory_space<vmem>>, vector<1x8xf32>
    %12 = vector.broadcast %11 : vector<1x8xf32> to vector<16x8xf32>
    %13 = arith.addf %10, %12 : vector<16x8xf32>
    %c0_8 = arith.constant 0 : index
    %c0_9 = arith.constant 0 : index
    %14 = vector.load %arg4[%c0_8, %c0_9] : memref<16x8xf32, #tpu.memory_space<vmem>>, vector<16x8xf32>
    tpu.vector_store %arg4[%c0_8, %c0_9], %13 {strides = array<i32>} : memref<16x8xf32, #tpu.memory_space<vmem>>, vector<16x8xf32>,
    return
  }
  func.func @transform_0(%arg0: i32) -> (i32, i32, i32, i32) {
    %c0_i32 = arith.constant 0 : i32
    %c0_i32_0 = arith.constant 0 : i32
    %c0_i32_1 = arith.constant 0 : i32
    %c0_i32_2 = arith.constant 0 : i32
    return %arg0, %c0_i32, %c0_i32_0, %c0_i32_1 : i32, i32, i32, i32
  }
  func.func @transform_1(%arg0: i32) -> (i32, i32) {
    %c0_i32 = arith.constant 0 : i32
    %c0_i32_0 = arith.constant 0 : i32
    %c0_i32_1 = arith.constant 0 : i32
    return %c0_i32, %c0_i32_0 : i32, i32
  }
  func.func @transform_2(%arg0: i32) -> (i32, i32) {
    %c0_i32 = arith.constant 0 : i32
    %c0_i32_0 = arith.constant 0 : i32
    %c0_i32_1 = arith.constant 0 : i32
    return %c0_i32, %c0_i32_0 : i32, i32
  }
  func.func @transform_3(%arg0: i32) -> (i32, i32) {
    %c0_i32 = arith.constant 0 : i32
    %c0_i32_0 = arith.constant 0 : i32
    return %arg0, %c0_i32 : i32, i32
  }
}

</mosaic_0001>

<bundles_post_ra>
// kernel: tpu_custom_call.1
= control target key start
LH: loop header
LB: loop body
LE: loop exit
PB: predicated region body
PF: predicated region fallthrough
CT: control target
= control target key end

     0   :  { %s484_s12 = smov 0   ;;  %s513_s0 = inlined_call_operand.vmem [shape: f32[16,2,8,8], index: 0, kind: input, shape index: {}]   ;;  %s514_s1 = inlined_call_operand.vmem [shape: f32[8,8], index: 1, kind: input, shape index: {}]   ;;  %s515_s2 = inlined_call_operand.vmem [shape: f32[1,8], index: 2, kind: input, shape index: {}]   ;;  %s516_s3 = inlined_call_operand.vmem [shape: f32[128,8], index: 3, kind: output, shape index: {}]  }
   0x1 LB: > { %s412_s13 = sadd.s32 4294967295, %s462_s12   ;;  %p416_p0 = scmp.ge.s32.totalorder %s462_s12, 1  ;;  %s462_s12 = sphi %s484_s12, %s13_s12  }
   0x2   : > { %p139_p1 = scmp.lt.s32.totalorder %s462_s12, 9 }
   0x4   : > { %p140_p2 = pnand %p416_p0, %p139_p1 }
   0x5   : > { %v181_v0 = vld [vmem:[%s514_s1] sm:$0xff] (!%p140_p2)  ;;  %s417_s16 = sshll.u32 (!%p140_p2), %s412_s13, 1  ;;  %vm182_vm0 = vcmask (!%p140_p2), 64512  }
   0x6   : > { %143 = sbr.rel (%p140_p2) target bundleno = 236 (0xec), region = 32  ;;  %436 = vmatprep.subr.mxu1 (!%p140_p2), %v181_v0  ;;  %441 = vmatprep.subr.mxu0 (!%p140_p2), %v181_v0  ;;  %p165_p3 = scmp.lt.s32.totalorder (!%p140_p2), %s417_s16, 15  ;;  %v426_v7 = vld [vmem:[%s515_s2] ss:$0 sm:$0xff] (!%p140_p2) }
   0x7   : > { %437 = vmatpush3.msra.mxu1 (!%p140_p2), %v181_v0  ;;  %442 = vmatpush3.msra.mxu0 (!%p140_p2), %v181_v0 }
   0xd   : > { %s518_s16 = smov (!%p165_p3, %s417_s16), 15 }
   0xe   : > { %s429_s17 = sshll.u32 %s518_s16, 4  ;;  %s421_s21 = sshll.u32 %s518_s16, 3 }
   0xf   : > { %s169_s20 = scalar_lea.vmem %s513_s0, %s429_s17  ;;  %s175_s26 = scalar_lea.vmem %s516_s3, %s421_s21 }
  0x10   : > { %v178_v1 = vld [vmem:[%s169_s20 + $0x8] sm:$0xff]  ;;  %v177_v2 = vld [vmem:[%s169_s20] sm:$0xff]  ;;  %v180_v3 = vld [vmem:[%s169_s20 + $0x18] sm:$0xff] }
  0x11   : > { %438 = vmatprep.mubr.msk.f32.mxu1 %vm182_vm0, %v178_v1  ;;  %443 = vmatprep.mubr.msk.f32.mxu0 %vm182_vm0, %v177_v2  ;;  %v179_v4 = vld [vmem:[%s169_s20 + $0x10] sm:$0xff] }
  0x12   : > { %439 = vmatmul.mubr.msk.f32.vlgmr.msra.gmra.mrb[0].mxu1 %vm182_vm0, %v180_v3  ;;  %444 = vmatmul.mubr.msk.f32.vlgmr.msra.gmra.mrb[0].mxu0 %vm182_vm0, %v179_v4 }
  0xe5   : > { %v440_v5 = vpop.f32.mrb[0].mxu1  ;;  %v445_v6 = vpop.f32.mrb[0].mxu0 }
  0xe6   : > { %v342_v8 = vadd.f32 %v445_v6, %v440_v5  ;;  %v255_v9 = vpop.f32.mrb[1].mxu1  ;;  %v336_v10 = vpop.f32.mrb[1].mxu0 }
  0xe7   : > { %v337_v11 = vadd.f32 %v336_v10, %v255_v9 }
  0xe8   : > { %v353_v12 = vadd.f32 %v426_v7, %v342_v8 }
  0xe9   : > { %v352_v13 = vadd.f32 %v426_v7, %v337_v11 }
  0xea   : > { %355 = vst.msk [vmem:[%s175_s26 + $0x8] sm:$0xff] %vm182_vm0, %v353_v12 }
  0xeb   : > { %354 = vst.msk [vmem:[%s175_s26] sm:$0xff] %vm182_vm0, %v352_v13 }
  0xec PF: > { %s13_s12 = sadd.s32 1, %s462_s12  }
  0xed   : > { %p10_p4 = scmp.ge.s32.totalorder %s13_s12, 10  }
  0xef   :  { %12 = sbr.rel (!%p10_p4) target bundleno = 1 (0x1), region = 62 }

</bundles_post_ra>
